<compile_context>
chip_gen: v7x
topology: tpu7x:2x2x1
jax: 0.10.0
libtpu: 0.0.40
codegen_flags: <defaults>
</compile_context>

<pallas_src>
import functools

import jax
import jax.numpy as jnp
from jax import lax
from jax.experimental import pallas as pl
from jax.experimental.pallas import tpu as pltpu


# --------------------------------------------------------------------------
# Kernels
# --------------------------------------------------------------------------

def _normalize(x_f32, w_f32, eps, out_dtype):
    ms = jnp.mean(x_f32 * x_f32, axis=-1, keepdims=True)   # XLU reduction
    y = x_f32 * lax.rsqrt(ms + eps)                         # EUP rsqrt
    if w_f32 is not None:
        y = y * w_f32                                       # broadcast (1, hidden)
    return y.astype(out_dtype)


def _rmsnorm_body(x_ref, o_ref, w_f32, eps, chunk_rows):
    tile_rows = x_ref.shape[0]
    n_chunks = tile_rows // chunk_rows                      # tile_rows % chunk_rows == 0

    if n_chunks <= 1:
        x = x_ref[...].astype(jnp.float32)
        o_ref[...] = _normalize(x, w_f32, eps, o_ref.dtype)
    else:
        # Process the tile in row chunks so only ~1 MiB of f32 working set is
        # live at a time (matters for sub-32-bit inputs / large tiles).
        @pl.loop(0, n_chunks)
        def _(c):
            r = pl.multiple_of(c * chunk_rows, chunk_rows)
            x = x_ref[pl.ds(r, chunk_rows), :].astype(jnp.float32)
            o_ref[pl.ds(r, chunk_rows), :] = _normalize(x, w_f32, eps, o_ref.dtype)


def _rmsnorm_kernel(x_ref, w_ref, o_ref, *, eps, chunk_rows):
    w = w_ref[...].astype(jnp.float32)                      # (1, hidden)
    _rmsnorm_body(x_ref, o_ref, w, eps, chunk_rows)


def _rmsnorm_kernel_noweight(x_ref, o_ref, *, eps, chunk_rows):
    _rmsnorm_body(x_ref, o_ref, None, eps, chunk_rows)


# --------------------------------------------------------------------------
# Tiling / VMEM budgeting
# --------------------------------------------------------------------------

def _round_up(x, m):
    return ((x + m - 1) // m) * m


def _usable_vmem_bytes():
    """~3/4 of physical VMEM: ≈48 MiB on v7x (64 MiB), ≈96 MiB on v5e/v6e (128 MiB)."""
    try:
        cap = int(pltpu.get_tpu_info().vmem_capacity_bytes)
    except Exception:
        cap = 64 << 20                                      # conservative fallback
    return (cap * 3) // 4


def _pick_tiling(rows, hidden, itemsize, tile_rows=None, chunk_rows=None):
    """Pick (tile_rows, chunk_rows, usable_vmem). All rounded to sublane packing."""
    # sublane packing: f32 -> 8, bf16/f16 -> 16, int8/fp8 -> 32
    sublane = {4: 8, 2: 16, 1: 32}.get(itemsize, 8)
    rows_up = max(sublane, _round_up(rows, sublane))
    row_bytes = max(1, hidden * itemsize)

    usable_vmem = _usable_vmem_bytes()
    slack = 4 << 20
    # VMEM per step ≈ 2*(in + out) double-buffered tiles (+ small f32 chunk).
    max_block_bytes = max(1 << 20, (usable_vmem - slack) // 4)
    target_block_bytes = min(8 << 20, max_block_bytes)      # ~8 MiB input block
    min_block_bytes = min(2 << 20, target_block_bytes)      # never shrink below ~2 MiB

    if tile_rows is None:
        tr = max(sublane, target_block_bytes // row_bytes)
        tr = max(sublane, (tr // sublane) * sublane)
        # Keep ≥ ~8 grid steps so v7x's two TensorCores + the pipeline have
        # work, but don't let that push the block below ~min_block_bytes.
        steps_rows = _round_up(pl.cdiv(rows, 8), sublane)
        min_rows = max(sublane, _round_up(pl.cdiv(min_block_bytes, row_bytes), sublane))
        tr = min(tr, max(steps_rows, min_rows))
    else:
        tr = max(sublane, _round_up(int(tile_rows), sublane))

    tr = min(tr, rows_up)
    tr = max(sublane, (tr // sublane) * sublane)

    # In-kernel chunk: ~1 MiB of f32 working copy.
    if chunk_rows is None:
        cr = max(sublane, ((1 << 20) // max(1, hidden * 4) // sublane) * sublane)
    else:
        cr = max(sublane, _round_up(int(chunk_rows), sublane))
    cr = min(cr, tr)
    tr = max(cr, (tr // cr) * cr)                           # tile is a multiple of chunk

    return tr, cr, usable_vmem


# --------------------------------------------------------------------------
# Wrapper
# --------------------------------------------------------------------------

def rms_norm_pallas(x, weight=None, eps=1e-5, tile_rows=None, chunk_rows=None):
    """RMSNorm over the last axis of x. x: (..., hidden); weight: (hidden,) or None."""
    orig_shape = x.shape
    hidden = orig_shape[-1]
    rows = 1
    for d in orig_shape[:-1]:
        rows *= d
    x2 = x.reshape(rows, hidden)

    itemsize = jnp.dtype(x.dtype).itemsize
    tile_rows, chunk_rows, usable_vmem = _pick_tiling(
        rows, hidden, itemsize, tile_rows, chunk_rows)
    grid = (pl.cdiv(rows, tile_rows),)                      # partial last block OK

    # VMEM budget: double-buffered in/out tiles + chunked f32 working set +
    # weight + compiler slack, capped by the generation-aware usable VMEM.
    in_block = tile_rows * hidden * itemsize
    out_block = in_block
    chunk_f32 = 2 * chunk_rows * hidden * 4
    vmem_need = 2 * (in_block + out_block) + chunk_f32 + 2 * hidden * 4 + (4 << 20)
    vmem_limit = int(min(max(vmem_need, 16 << 20), usable_vmem))

    compiler_params = pltpu.CompilerParams(
        dimension_semantics=("parallel",),
        vmem_limit_bytes=vmem_limit,
    )
    x_spec = pl.BlockSpec((tile_rows, hidden), lambda i: (i, 0))
    o_spec = pl.BlockSpec((tile_rows, hidden), lambda i: (i, 0))
    out_shape = jax.ShapeDtypeStruct((rows, hidden), x.dtype)

    if weight is not None:
        w2 = weight.reshape(1, hidden)
        kernel = functools.partial(_rmsnorm_kernel, eps=eps, chunk_rows=chunk_rows)
        out = pl.pallas_call(
            kernel,
            out_shape=out_shape,
            grid_spec=pltpu.PrefetchScalarGridSpec(
                num_scalar_prefetch=0,
                grid=grid,
                in_specs=[x_spec, pl.BlockSpec((1, hidden), lambda i: (0, 0))],
                out_specs=o_spec,
            ),
            compiler_params=compiler_params,
        )(x2, w2)
    else:
        kernel = functools.partial(_rmsnorm_kernel_noweight, eps=eps, chunk_rows=chunk_rows)
        out = pl.pallas_call(
            kernel,
            out_shape=out_shape,
            grid_spec=pltpu.PrefetchScalarGridSpec(
                num_scalar_prefetch=0,
                grid=grid,
                in_specs=[x_spec],
                out_specs=o_spec,
            ),
            compiler_params=compiler_params,
        )(x2)

    return out.reshape(orig_shape)


def rms_norm_ref(x, weight=None, eps=1e-5):
    xf = x.astype(jnp.float32)
    out = xf * lax.rsqrt(jnp.mean(xf * xf, axis=-1, keepdims=True) + eps)
    if weight is not None:
        out = out * weight.astype(jnp.float32)
    return out.astype(x.dtype)


# --------------------------------------------------------------------------
# Demo / tests
# --------------------------------------------------------------------------

if __name__ == "__main__":
    key = jax.random.PRNGKey(0)
    k0, k1, k2, k3, k4 = jax.random.split(key, 5)

    def check(out, ref, atol, rtol):
        assert out.shape == ref.shape and out.dtype == ref.dtype
        a = jnp.asarray(out, jnp.float32)
        b = jnp.asarray(ref, jnp.float32)
        assert jnp.allclose(a, b, atol=atol, rtol=rtol), float(jnp.max(jnp.abs(a - b)))

    # 1) Basic f32 case with weight (hidden multiple of 128 -> lane-dense).
    batch, seq, hidden = 2, 8, 128
    x = jax.random.normal(k0, (batch, seq, hidden), dtype=jnp.float32)
    weight = jnp.ones((hidden,), dtype=jnp.float32)
    out = jax.block_until_ready(rms_norm_pallas(x, weight, eps=1e-5))
    check(out, rms_norm_ref(x, weight, eps=1e-5), atol=1e-4, rtol=1e-4)

    # 2) weight=None path (RMSNorm(..., weight=False)).
    out_nw = jax.block_until_ready(rms_norm_pallas(x, None, eps=1e-5))
    check(out_nw, rms_norm_ref(x, None, eps=1e-5), atol=1e-4, rtol=1e-4)

    # 3) Ragged grid: rows (=30) not divisible by the tile (=8); padded garbage
    #    rows in the last block must never be written back.
    xr = jax.random.normal(k1, (3, 10, 128), dtype=jnp.float32)
    wr = jax.random.normal(k2, (128,), dtype=jnp.float32) * 0.1 + 1.0
    out_r = jax.block_until_ready(rms_norm_pallas(xr, wr, eps=1e-5, tile_rows=8))
    check(out_r, rms_norm_ref(xr, wr, eps=1e-5), atol=1e-4, rtol=1e-4)

    # 4) bf16 input: f32 math, cast back; explicit odd tile gets rounded up to
    #    the bf16 sublane packing (16).
    xb = jax.random.normal(k3, (2, 9, 128), dtype=jnp.bfloat16)
    wb = jnp.ones((128,), dtype=jnp.bfloat16)
    out_b = jax.block_until_ready(rms_norm_pallas(xb, wb, eps=1e-5, tile_rows=9))
    check(out_b, rms_norm_ref(xb, wb, eps=1e-5), atol=2e-2, rtol=2e-2)

    # 5) Exercise the in-kernel chunked (pl.loop) path + multiple grid steps.
    xc = jax.random.normal(k4, (4, 64, 128), dtype=jnp.float32)
    out_c = jax.block_until_ready(
        rms_norm_pallas(xc, weight, eps=1e-5, tile_rows=64, chunk_rows=16))
    check(out_c, rms_norm_ref(xc, weight, eps=1e-5), atol=1e-4, rtol=1e-4)

    # 6) Tiny 1-D input (rows=1 < sublane): block bigger than array extent.
    xt = jax.random.normal(k0, (32,), dtype=jnp.float32)
    out_t = jax.block_until_ready(rms_norm_pallas(xt, None, eps=1e-5))
    check(out_t, rms_norm_ref(xt, None, eps=1e-5), atol=1e-4, rtol=1e-4)

    print("KERNEL_OK")
</pallas_src>

<mosaic_0001>
module attributes {stable_mosaic.version = 11 : i64} {
  func.func @_rmsnorm_kernel(%arg0: i32, %arg1: memref<16x128xf32, #tpu.memory_space<vmem>>, %arg2: memref<1x128xf32, #tpu.memory_space<vmem>>, %arg3: memref<16x128xf32, #tpu.memory_space<vmem>>) attributes {dimension_semantics = [#tpu.dimension_semantics<parallel>], iteration_bounds = array<i64: 1>, scalar_prefetch = 0 : i64, scratch_operands = 0 : i64, tpu.core_type = #tpu.core_type<tc>, window_params = [{transform_indices = @transform_0, window_bounds = array<i64: 16, 128>}, {pipeline_mode = #tpu.pipeline_mode<synchronous>, transform_indices = @transform_1, window_bounds = array<i64: 1, 128>}, {transform_indices = @transform_2, window_bounds = array<i64: 16, 128>}]} {
    %c0 = arith.constant 0 : index
    %c0_0 = arith.constant 0 : index
    %0 = vector.load %arg2[%c0, %c0_0] : memref<1x128xf32, #tpu.memory_space<vmem>>, vector<1x128xf32>
    %c0_1 = arith.constant 0 : index
    %c0_2 = arith.constant 0 : index
    %1 = vector.load %arg1[%c0_1, %c0_2] : memref<16x128xf32, #tpu.memory_space<vmem>>, vector<16x128xf32>
    %2 = arith.mulf %1, %1 : vector<16x128xf32>
    %cst = arith.constant dense<0.000000e+00> : vector<16xf32>
    %3 = vector.multi_reduction <add>, %2, %cst [1] : vector<16x128xf32> to vector<16xf32>
    %4 = vector.shape_cast %3 : vector<16xf32> to vector<16x1xf32>
    %cst_3 = arith.constant 1.280000e+02 : f32
    %5 = vector.broadcast %cst_3 : f32 to vector<16x1xf32>
    %6 = arith.divf %4, %5 : vector<16x1xf32>
    %cst_4 = arith.constant 9.99999974E-6 : f32
    %7 = vector.broadcast %cst_4 : f32 to vector<16x1xf32>
    %8 = arith.addf %6, %7 : vector<16x1xf32>
    %9 = math.rsqrt %8 : vector<16x1xf32>
    %10 = vector.broadcast %9 : vector<16x1xf32> to vector<16x128xf32>
    %11 = arith.mulf %1, %10 : vector<16x128xf32>
    %12 = vector.broadcast %0 : vector<1x128xf32> to vector<16x128xf32>
    %13 = arith.mulf %11, %12 : vector<16x128xf32>
    %c0_5 = arith.constant 0 : index
    %c0_6 = arith.constant 0 : index
    %14 = vector.load %arg3[%c0_5, %c0_6] : memref<16x128xf32, #tpu.memory_space<vmem>>, vector<16x128xf32>
    tpu.vector_store %arg3[%c0_5, %c0_6], %13 {strides = array<i32>} : memref<16x128xf32, #tpu.memory_space<vmem>>, vector<16x128xf32>,
    return
  }
  func.func @transform_0(%arg0: i32) -> (i32, i32) {
    %c0_i32 = arith.constant 0 : i32
    %c0_i32_0 = arith.constant 0 : i32
    return %arg0, %c0_i32 : i32, i32
  }
  func.func @transform_1(%arg0: i32) -> (i32, i32) {
    %c0_i32 = arith.constant 0 : i32
    %c0_i32_0 = arith.constant 0 : i32
    %c0_i32_1 = arith.constant 0 : i32
    return %c0_i32, %c0_i32_0 : i32, i32
  }
  func.func @transform_2(%arg0: i32) -> (i32, i32) {
    %c0_i32 = arith.constant 0 : i32
    %c0_i32_0 = arith.constant 0 : i32
    return %arg0, %c0_i32 : i32, i32
  }
}

</mosaic_0001>

<bundles_post_ra>
// kernel: tpu_custom_call.1
= control target key start
LH: loop header
LB: loop body
LE: loop exit
PB: predicated region body
PF: predicated region fallthrough
CT: control target
= control target key end

     0   :  { %7 = vsyncpa [#allocation3], 0  ;;  %s180_s0 = inlined_call_operand.hbm [shape: f32[16,128], index: 0, kind: input, shape index: {}]   ;;  %s181_s1 = inlined_call_operand.vmem [shape: f32[1,128], index: 1, kind: input, shape index: {}]   ;;  %s182_s2 = inlined_call_operand.hbm [shape: f32[16,128], index: 2, kind: output, shape index: {}]  }
   0x1   :  { %8 = vsyncpa [#allocation4], 0  ;;  %s128_s9 = smov [#allocation2]   ;;  %s80_s13 = scalar_lea.hbm %s180_s0, 256 }
   0x2   :  { %s14_s10 = sshll.u32 %s128_s9, 4  ;;  %p81_p0 = scmp.ne.s32.totalorder %s180_s0, %s80_s13  ;;  %s15_s10 = int_to_ptr.vmem [resolvable:$true] %s14_s10 }
   0x3   :  { %p84_p1 = scmp.lt.u32.totalorder %s80_s13, %s180_s0 }
   0x5   :  { %p86_p2 = pnand %p84_p1, %p81_p0 }
   0x7   :  { %89 = shalt.err (!%p86_p2)
}
   0x8   :  { %s90_s18 = scalar_lea.vmem %s15_s10, 256  ;;  %p95_p4 = scmp.lt.s32.totalorder %s15_s10, %s15_s10 }
   0x9   :  { %p91_p3 = scmp.ne.s32.totalorder %s15_s10, %s90_s18  ;;  %p96_p5 = scmp.lt.s32.totalorder %s90_s18, %s90_s18 }
   0xb   :  { %p97_p6 = por %p96_p5, %p95_p4 }
   0xd   :  { %p98_p7 = pnand %p97_p6, %p91_p3 }
   0xf   :  { %101 = shalt.err (!%p98_p7)
}
  0x10   :  { %s129_s19 = smov 128   ;;  %s130_s20 = smov 8  }
  0x11   :  { %20 = dma.hbm_to_vmem [thread:$0]  %s180_s0, 256, %s15_s10, [#allocation3], %s129_s19, %s129_s19, %s130_s20  }
  0x12   :  { %124 = dma.done.wait [#allocation3], 256  }
  0x13   :  { %125 = vsyncadd [#allocation3], 4294967040  ;;  %v27_v0 = vld [vmem:[#allocation2] sm:$0xff]  ;;  %v28_v1 = vld [vmem:[#allocation2 + $0x8] sm:$0xff]  ;;  %s131_s0 = smov [#allocation5]  }
  0x14   :  { %v29_v2 = vmul.f32 %v27_v0, %v27_v0  ;;  %v30_v3 = vmul.f32 %v28_v1, %v28_v1  ;;  %v71_v11 = vld [vmem:[%s181_s1] ss:$0 sm:$0xff]  ;;  %s59_s25 = sshll.u32 %s131_s0, 4  ;;  %s60_s25 = int_to_ptr.vmem [resolvable:$true] %s59_s25 }
  0x15   :  { %s102_s26 = scalar_lea.vmem %s60_s25, 256  ;;  %p107_p9 = scmp.lt.s32.totalorder %s60_s25, %s60_s25 }
  0x16   :  { %31 = vadd.xlane.f32.xlu0 %v29_v2  ;;  %p103_p8 = scmp.ne.s32.totalorder %s60_s25, %s102_s26  ;;  %p108_p10 = scmp.lt.s32.totalorder %s102_s26, %s102_s26 }
  0x18   :  { %p109_p11 = por %p108_p10, %p107_p9 }
  0x1a   :  { %33 = vadd.xlane.f32.xlu0 %v30_v3  ;;  %p110_p12 = pnand %p109_p11, %p103_p8 }
  0xa3   :  { %v32_v4 = vpop.xlane.xlu0 %31 }
  0xa4   :  { %v36_v5 = vmul.f32 0.0078125, %v32_v4 }
  0xa6   :  { %v38_v6 = vadd.f32 1e-05, %v36_v5 }
  0xa7   :  { %v34_v7 = vpop.xlane.xlu0 %33 }
  0xa8   :  { %76 = vrsqrt.f32 %v38_v6  ;;  %v37_v8 = vmul.f32 0.0078125, %v34_v7 }
  0xaa   :  { %v39_v9 = vadd.f32 1e-05, %v37_v8 }
  0xac   :  { %78 = vrsqrt.f32 %v39_v9 }
  0xb2   :  { %v77_v10 = vpop.eup %76 }
  0xb3   :  { %v42_v12 = vmul.f32 %v77_v10, %v27_v0 }
  0xb5   :  { %v50_v13 = vmul.f32 %v71_v11, %v42_v12 }
  0xb6   :  { %v79_v14 = vpop.eup %78 }
  0xb7   :  { %v43_v15 = vmul.f32 %v79_v14, %v28_v1  ;;  %52 = vst [vmem:[#allocation5] sm:$0xff] %v50_v13 }
  0xb9   :  { %v51_v16 = vmul.f32 %v71_v11, %v43_v15 }
  0xbb   :  { %53 = vst [vmem:[#allocation5 + $0x8] sm:$0xff] %v51_v16 }
  0xbc   :  { %113 = shalt.err (!%p110_p12)
}
  0xbd   :  { %s114_s1 = scalar_lea.hbm %s182_s2, 256 }
  0xbe   :  { %p115_p13 = scmp.ne.s32.totalorder %s182_s2, %s114_s1  ;;  %p118_p0 = scmp.lt.u32.totalorder %s114_s1, %s182_s2 }
  0xc0   :  { %p120_p1 = pnand %p118_p0, %p115_p13 }
  0xc2   :  { %123 = shalt.err (!%p120_p1)
}
  0xc3   :  { %65 = dma.vmem_to_hbm [thread:$0]  %s60_s25, 256, %s182_s2, [#allocation4], %s129_s19, %s129_s19, %s130_s20  }
  0xc4   :  { %126 = dma.done.wait [#allocation4], 256  }
  0xc5   :  { %127 = vsyncadd [#allocation4], 4294967040 }
  0xc6   :  { %69 = vsyncpa [#allocation3], 1 }
  0xc7   :  { %70 = vsyncpa [#allocation4], 1 }

</bundles_post_ra>
